<compile_context>
chip_gen: v5e
topology: v5e:2x2
jax: 0.10.0
libtpu: 0.0.40
codegen_flags: <defaults>
</compile_context>

<pallas_src>
import functools

import jax
import jax.numpy as jnp
from jax.experimental import pallas as pl
from jax.experimental.pallas import tpu as pltpu


def _round_up(x, m):
    return (x + m - 1) // m * m


def _focal_loss_kernel(pred_ref, target_ref, *rest, gamma, alpha,
                       loss_weight, inv_avg_factor, has_weight):
    if has_weight:
        weight_ref, out_ref = rest
    else:
        (out_ref,) = rest

    x = pred_ref[...].astype(jnp.float32)
    t = target_ref[...].astype(jnp.float32)

    # Shared transcendental: e = exp(-|x|) feeds both the sigmoid and the
    # numerically-stable BCE-with-logits.
    e = jnp.exp(-jnp.abs(x))
    inv_1pe = 1.0 / (1.0 + e)
    # sigmoid(x) = 1/(1+e) for x >= 0, e/(1+e) for x < 0
    p = jnp.where(x >= 0.0, inv_1pe, e * inv_1pe)

    # pt = (1 - p) * t + p * (1 - t)  ==  p + t - 2*p*t
    pt = p + t - 2.0 * p * t

    # alpha term: alpha*t + (1-alpha)*(1-t) == (2*alpha - 1)*t + (1 - alpha)
    aw = (2.0 * alpha - 1.0) * t + (1.0 - alpha)

    # pt ** gamma  (gamma is a static Python float -> specialize at trace time)
    if float(gamma) == 2.0:
        pt_g = pt * pt
    elif float(gamma) == int(gamma) and 0 <= int(gamma) <= 4:
        g = int(gamma)
        if g == 0:
            pt_g = jnp.ones_like(pt)
        else:
            pt_g = pt
            for _ in range(g - 1):
                pt_g = pt_g * pt
    else:
        pt_g = jnp.power(pt, float(gamma))

    focal_w = aw * pt_g

    # binary_cross_entropy_with_logits (reduction='none'), stable form:
    #   bce = max(x, 0) - x*t + log(1 + exp(-|x|))
    bce = jnp.maximum(x, 0.0) - x * t + jnp.log1p(e)

    loss = bce * focal_w
    if has_weight:
        loss = loss * weight_ref[...].astype(jnp.float32)
    loss = loss * (loss_weight * inv_avg_factor)
    out_ref[...] = loss.astype(out_ref.dtype)


def _flatten_pad_2d(arr, rows_padded, lane):
    flat = arr.reshape(-1)
    pad = rows_padded * lane - flat.shape[0]
    if pad:
        flat = jnp.pad(flat, (0, pad))
    return flat.reshape(rows_padded, lane)


def focal_loss(pred, target, weight=None, *, loss_weight=1.0,
               reduction='none', gamma=2.0, alpha=0.25, avg_factor=1.0,
               max_tile_rows=1024, lane=128):
    """FocalLoss.forward (use_sigmoid=True)."""
    assert pred.shape == target.shape
    orig_shape = pred.shape
    total = 1
    for s in orig_shape:
        total *= s

    # Row geometry: rows of 128 lanes, block rows aligned to 32 sublanes
    # (legal tiling for f32 / bf16 / int8 / bool inputs), capped at
    # max_tile_rows so double-buffered VMEM stays small even on v7x (64 MiB
    # physical / 32 MiB default scoped per TC).
    rows = pl.cdiv(total, lane)
    assert max_tile_rows % 32 == 0
    block_rows = min(max_tile_rows, _round_up(rows, 32))
    rows_padded = _round_up(rows, block_rows)
    grid = (rows_padded // block_rows,)
    block = (block_rows, lane)

    pred2d = _flatten_pad_2d(pred, rows_padded, lane)
    # NOTE: target kept in its native (possibly narrow) dtype; cast to f32
    # happens inside the kernel.
    target2d = _flatten_pad_2d(target, rows_padded, lane)

    has_weight = weight is not None
    inputs = [pred2d, target2d]
    in_specs = [
        pl.BlockSpec(block, lambda i: (i, 0)),
        pl.BlockSpec(block, lambda i: (i, 0)),
    ]
    if has_weight:
        inputs.append(_flatten_pad_2d(weight, rows_padded, lane))
        in_specs.append(pl.BlockSpec(block, lambda i: (i, 0)))

    kernel = functools.partial(
        _focal_loss_kernel,
        gamma=float(gamma),
        alpha=float(alpha),
        loss_weight=float(loss_weight),
        inv_avg_factor=1.0 / float(avg_factor),
        has_weight=has_weight,
    )

    loss2d = pl.pallas_call(
        kernel,
        out_shape=jax.ShapeDtypeStruct((rows_padded, lane), pred.dtype),
        grid_spec=pltpu.PrefetchScalarGridSpec(
            num_scalar_prefetch=0,
            grid=grid,
            in_specs=in_specs,
            out_specs=pl.BlockSpec(block, lambda i: (i, 0)),
        ),
        compiler_params=pltpu.CompilerParams(
            dimension_semantics=("parallel",)),
    )(*inputs)

    loss = loss2d.reshape(-1)[:total].reshape(orig_shape)
    if reduction == 'mean':
        loss = loss.mean()
    elif reduction == 'sum':
        loss = loss.sum()
    # 'none': elementwise, already scaled by loss_weight / avg_factor in the
    # kernel; for mean/sum the 1/avg_factor commutes with the reduce, so the
    # result equals reduce(loss_weight * focal_loss) / avg_factor per spec.
    return loss


def _reference_focal_loss(pred, target, weight=None, *, loss_weight=1.0,
                          gamma=2.0, alpha=0.25, avg_factor=1.0,
                          reduction='none'):
    p = jax.nn.sigmoid(pred)
    t = target.astype(pred.dtype)
    pt = (1 - p) * t + p * (1 - t)
    fw = (alpha * t + (1 - alpha) * (1 - t)) * jnp.power(pt, gamma)
    bce = jnp.maximum(pred, 0) - pred * t + jnp.log1p(jnp.exp(-jnp.abs(pred)))
    loss = bce * fw
    if weight is not None:
        loss = loss * weight
    loss = loss_weight * loss
    if reduction == 'mean':
        loss = loss.mean()
    elif reduction == 'sum':
        loss = loss.sum()
    return loss / avg_factor


if __name__ == "__main__":
    key = jax.random.PRNGKey(0)
    k1, k2 = jax.random.split(key)

    # NCHW logits / binary targets, small shape: (2, 4, 16, 16)
    pred = jax.random.normal(k1, (2, 4, 16, 16), dtype=jnp.float32)
    target = (jax.random.uniform(k2, (2, 4, 16, 16)) > 0.8).astype(jnp.float32)

    # reduction='none' (module default)
    out = focal_loss(pred, target, loss_weight=1.0, reduction='none',
                     gamma=2.0, alpha=0.25, avg_factor=1.0)
    out = jax.block_until_ready(out)
    ref = _reference_focal_loss(pred, target)
    assert out.shape == pred.shape
    assert jnp.allclose(out, ref, atol=1e-5, rtol=1e-5), "mismatch (none)"

    # reduction='mean' with avg_factor (exercises the scalar path too)
    out_m = focal_loss(pred, target, loss_weight=0.5, reduction='mean',
                       gamma=2.0, alpha=0.25, avg_factor=3.0)
    out_m = jax.block_until_ready(out_m)
    ref_m = _reference_focal_loss(pred, target, loss_weight=0.5,
                                  reduction='mean', avg_factor=3.0)
    assert jnp.allclose(out_m, ref_m, atol=1e-5, rtol=1e-5), "mismatch (mean)"

    print("KERNEL_OK")
</pallas_src>

<mosaic_0001>
module attributes {stable_mosaic.version = 11 : i64} {
  func.func @_focal_loss_kernel(%arg0: i32, %arg1: memref<32x128xf32, #tpu.memory_space<vmem>>, %arg2: memref<32x128xf32, #tpu.memory_space<vmem>>, %arg3: memref<32x128xf32, #tpu.memory_space<vmem>>) attributes {dimension_semantics = [#tpu.dimension_semantics<parallel>], iteration_bounds = array<i64: 1>, scalar_prefetch = 0 : i64, scratch_operands = 0 : i64, tpu.core_type = #tpu.core_type<tc>, window_params = [{transform_indices = @transform_0, window_bounds = array<i64: 32, 128>}, {transform_indices = @transform_1, window_bounds = array<i64: 32, 128>}, {transform_indices = @transform_2, window_bounds = array<i64: 32, 128>}]} {
    %c0 = arith.constant 0 : index
    %c0_0 = arith.constant 0 : index
    %0 = vector.load %arg1[%c0, %c0_0] : memref<32x128xf32, #tpu.memory_space<vmem>>, vector<32x128xf32>
    %c0_1 = arith.constant 0 : index
    %c0_2 = arith.constant 0 : index
    %1 = vector.load %arg2[%c0_1, %c0_2] : memref<32x128xf32, #tpu.memory_space<vmem>>, vector<32x128xf32>
    %2 = math.absf %0 : vector<32x128xf32>
    %cst = arith.constant 0.000000e+00 : f32
    %3 = vector.broadcast %cst : f32 to vector<32x128xf32>
    %4 = arith.subf %3, %2 : vector<32x128xf32>
    %5 = math.exp %4 : vector<32x128xf32>
    %cst_3 = arith.constant 1.000000e+00 : f32
    %6 = vector.broadcast %cst_3 : f32 to vector<32x128xf32>
    %7 = arith.addf %6, %5 : vector<32x128xf32>
    %cst_4 = arith.constant 1.000000e+00 : f32
    %8 = vector.broadcast %cst_4 : f32 to vector<32x128xf32>
    %9 = arith.divf %8, %7 : vector<32x128xf32>
    %cst_5 = arith.constant 0.000000e+00 : f32
    %10 = vector.broadcast %cst_5 : f32 to vector<32x128xf32>
    %11 = arith.cmpf oge, %0, %10 : vector<32x128xf32>
    %12 = arith.mulf %5, %9 : vector<32x128xf32>
    %13 = arith.select %11, %9, %12 : vector<32x128xi1>, vector<32x128xf32>
    %14 = arith.addf %13, %1 : vector<32x128xf32>
    %cst_6 = arith.constant 2.000000e+00 : f32
    %15 = vector.broadcast %cst_6 : f32 to vector<32x128xf32>
    %16 = arith.mulf %15, %13 : vector<32x128xf32>
    %17 = arith.mulf %16, %1 : vector<32x128xf32>
    %18 = arith.subf %14, %17 : vector<32x128xf32>
    %cst_7 = arith.constant -5.000000e-01 : f32
    %19 = vector.broadcast %cst_7 : f32 to vector<32x128xf32>
    %20 = arith.mulf %19, %1 : vector<32x128xf32>
    %cst_8 = arith.constant 7.500000e-01 : f32
    %21 = vector.broadcast %cst_8 : f32 to vector<32x128xf32>
    %22 = arith.addf %20, %21 : vector<32x128xf32>
    %23 = arith.mulf %18, %18 : vector<32x128xf32>
    %24 = arith.mulf %22, %23 : vector<32x128xf32>
    %cst_9 = arith.constant 0.000000e+00 : f32
    %25 = vector.broadcast %cst_9 : f32 to vector<32x128xf32>
    %26 = arith.maximumf %0, %25 : vector<32x128xf32>
    %27 = arith.mulf %0, %1 : vector<32x128xf32>
    %28 = arith.subf %26, %27 : vector<32x128xf32>
    %29 = math.log1p %5 : vector<32x128xf32>
    %30 = arith.addf %28, %29 : vector<32x128xf32>
    %31 = arith.mulf %30, %24 : vector<32x128xf32>
    %cst_10 = arith.constant 1.000000e+00 : f32
    %32 = vector.broadcast %cst_10 : f32 to vector<32x128xf32>
    %33 = arith.mulf %31, %32 : vector<32x128xf32>
    %c0_11 = arith.constant 0 : index
    %c0_12 = arith.constant 0 : index
    %34 = vector.load %arg3[%c0_11, %c0_12] : memref<32x128xf32, #tpu.memory_space<vmem>>, vector<32x128xf32>
    tpu.vector_store %arg3[%c0_11, %c0_12], %33 {strides = array<i32>} : memref<32x128xf32, #tpu.memory_space<vmem>>, vector<32x128xf32>,
    return
  }
  func.func @transform_0(%arg0: i32) -> (i32, i32) {
    %c0_i32 = arith.constant 0 : i32
    %c0_i32_0 = arith.constant 0 : i32
    return %arg0, %c0_i32 : i32, i32
  }
  func.func @transform_1(%arg0: i32) -> (i32, i32) {
    %c0_i32 = arith.constant 0 : i32
    %c0_i32_0 = arith.constant 0 : i32
    return %arg0, %c0_i32 : i32, i32
  }
  func.func @transform_2(%arg0: i32) -> (i32, i32) {
    %c0_i32 = arith.constant 0 : i32
    %c0_i32_0 = arith.constant 0 : i32
    return %arg0, %c0_i32 : i32, i32
  }
}

</mosaic_0001>

<bundles_post_ra>
// kernel: tpu_custom_call.1
= control target key start
LH: loop header
LB: loop body
LE: loop exit
PB: predicated region body
PF: predicated region fallthrough
CT: control target
= control target key end

     0   :  { %7 = vsyncpa [#allocation3], 0  ;;  %s598_s0 = inlined_call_operand.hbm [shape: f32[32,128], index: 0, kind: input, shape index: {}]   ;;  %s599_s1 = inlined_call_operand.hbm [shape: f32[32,128], index: 1, kind: input, shape index: {}]   ;;  %s600_s2 = inlined_call_operand.hbm [shape: f32[32,128], index: 2, kind: output, shape index: {}]  }
   0x1   :  { %8 = vsyncpa [#allocation6], 0 }
   0x2   :  { %9 = vsyncpa [#allocation4], 0  ;;  %s14_s11 = sshll.u32 %s598_s0, 4  ;;  %s363_s12 = smov [#allocation2]   ;;  %s15_s11 = int_to_ptr.hbm [resolvable:$true] %s14_s11 }
   0x3   :  { %s16_s13 = sshll.u32 %s363_s12, 4  ;;  %s27_s16 = sshll.u32 %s599_s1, 4  ;;  %s17_s13 = int_to_ptr.vmem [resolvable:$true] %s16_s13  ;;  %s28_s16 = int_to_ptr.hbm [resolvable:$true] %s27_s16 }
   0x4   :  { %s364_s17 = smov 128   ;;  %s365_s18 = smov 8  }
   0x5   :  { %22 = dma.hbm_to_vmem [thread:$0]  %s15_s11, 512, %s17_s13, [#allocation3], %s364_s17, %s364_s17, %s365_s18  }
   0x6   :  { %s366_s19 = smov [#allocation5]  }
   0x7   :  { %s29_s20 = sshll.u32 %s366_s19, 4  ;;  %s30_s20 = int_to_ptr.vmem [resolvable:$true] %s29_s20 }
   0x8   :  { %35 = dma.hbm_to_vmem [thread:$0]  %s28_s16, 512, %s30_s20, [#allocation6], %s364_s17, %s364_s17, %s365_s18  }
   0x9   :  { %357 = dma.done.wait [#allocation3], 512  }
   0xa   :  { %358 = vsyncadd [#allocation3], 4294966784 }
   0xb   :  { %359 = dma.done.wait [#allocation6], 512  }
   0xc   :  { %360 = vsyncadd [#allocation6], 4294966784  ;;  %v395_v0 = vld [vmem:[#allocation2] sm:$0xff]  ;;  %v397_v1 = vld [vmem:[#allocation2 + $0x8] sm:$0xff]  ;;  %s367_s0 = smov [#allocation7]   ;;  %s242_s23 = sshll.u32 %s600_s2, 4  ;;  %s243_s23 = int_to_ptr.hbm [resolvable:$true] %s242_s23 }
   0xd   :  { %v52_v2 = vand.u32 2147483647, %v395_v0  ;;  %v53_v3 = vand.u32 2147483647, %v397_v1  ;;  %v401_v4 = vld [vmem:[#allocation2 + $0x10] sm:$0xff]  ;;  %v404_v6 = vld [vmem:[#allocation2 + $0x18] sm:$0xff] }
   0xe   :  { %v54_v5 = vand.u32 2147483647, %v401_v4  ;;  %v55_v12 = vand.u32 2147483647, %v404_v6  ;;  %v407_v15 = vld [vmem:[#allocation5] sm:$0xff]  ;;  %v176_v17 = vmax.f32 %v395_v0, 0.0 }
   0xf   :  { %v56_v7 = vsub.f32 0.0, %v52_v2  ;;  %v57_v8 = vsub.f32 0.0, %v53_v3  ;;  %v160_v16 = vmul.f32 -0.5, %v407_v15  ;;  %v180_v18 = vmul.f32 %v407_v15, %v395_v0  ;;  %v413_v19 = vld [vmem:[#allocation5 + $0x8] sm:$0xff]  ;;  %v437_v34 = vld [vmem:[#allocation5 + $0x10] sm:$0xff]  ;;  %s240_s1 = sshll.u32 %s367_s0, 4  ;;  %s241_s1 = int_to_ptr.vmem [resolvable:$true] %s240_s1 }
  0x10   :  { %v58_v9 = vsub.f32 0.0, %v54_v5  ;;  %v59_v14 = vsub.f32 0.0, %v55_v12  ;;  %v161_v21 = vmul.f32 -0.5, %v413_v19  ;;  %v177_v29 = vmax.f32 %v397_v1, 0.0 }
  0x11   :  { %v60_v10 = vmul.f32 1.442695, %v56_v7  ;;  %v62_v11 = vmul.f32 1.442695, %v57_v8  ;;  %v425_v27 = vadd.f32 0.75, %v160_v16  ;;  %v427_v28 = vsub.f32 %v176_v17, %v180_v18 }
  0x12   :  { %v64_v13 = vmul.f32 1.442695, %v58_v9  ;;  %v66_v22 = vmul.f32 1.442695, %v59_v14  ;;  %v433_v32 = vadd.f32 0.75, %v161_v21  ;;  %v181_v33 = vmul.f32 %v413_v19, %v397_v1 }
  0x13   :  { %261 = vpow2.f32 %v60_v10  ;;  %v162_v37 = vmul.f32 -0.5, %v437_v34  ;;  %v178_v46 = vmax.f32 %v401_v4, 0.0  ;;  %vm132_vm5 = vcmp.ge.f32.partialorder %v395_v0, 0.0 }
  0x14   :  { %263 = vpow2.f32 %v62_v11  ;;  %v453_v45 = vsub.f32 %v177_v29, %v181_v33  ;;  %vm133_vm8 = vcmp.ge.f32.partialorder %v397_v1, 0.0  ;;  %v182_v5 = vmul.f32 %v437_v34, %v401_v4 }
  0x15   :  { %265 = vpow2.f32 %v64_v13  ;;  %v476_v58 = vadd.f32 0.75, %v162_v37  ;;  %vm134_vm14 = vcmp.ge.f32.partialorder %v401_v4, 0.0 }
  0x19   :  { %v415_v20 = vpop.eup %261 }
  0x1a   :  { %v418_v23 = vpop.eup %263  ;;  %v68_v24 = vadd.f32 1.0, %v415_v20  ;;  %v191_v25 = vmul.f32 -0.5, %v415_v20  ;;  %v194_v31 = vand.u32 2147483647, %v415_v20 }
  0x1b   :  { %v423_v26 = vadd.f32 1.0, %v418_v23  ;;  %v430_v30 = vpop.eup %265  ;;  %v200_v40 = vmul.f32 -0.5, %v418_v23  ;;  %v203_v42 = vand.u32 2147483647, %v418_v23 }
  0x1c   :  { %267 = vrcp.f32 %v68_v24  ;;  %v81_v35 = vand.u32 2147483647, %v68_v24  ;;  %v83_v36 = vand.u32 2147483648, %v68_v24  ;;  %v192_v38 = vadd.f32 1.0, %v191_v25  ;;  %v51_v25 = vld [vmem:[#allocation5 + $0x18] sm:$0xff] }
  0x1d   :  { %269 = vpow2.f32 %v66_v22  ;;  %v96_v39 = vand.u32 2147483647, %v423_v26  ;;  %v98_v41 = vand.u32 2147483648, %v423_v26  ;;  %v447_v43 = vadd.f32 1.0, %v430_v30 }
  0x1e   :  { %271 = vrcp.f32 %v423_v26  ;;  %vm77_vm0 = vweird.f32 %v68_v24  ;;  %vm449_vm1 = vcmp.lt.f32.partialorder %v194_v31, 0.0004427343  ;;  %vm456_vm2 = vcmp.eq.f32.partialorder %v81_v35, 8.507059e+37 }
  0x1f   :  { %273 = vlog2.f32 %v68_v24  ;;  %v84_v49 = vor.u32 1.1754944e-38, %v83_v36  ;;  %vm92_vm3 = vweird.f32 %v423_v26  ;;  %v465_v52 = vmul.f32 %v415_v20, %v192_v38 }
  0x20   :  { %275 = vlog2.f32 %v423_v26  ;;  %vm467_vm4 = vcmp.eq.f32.partialorder %v96_v39, 8.507059e+37  ;;  %v201_v54 = vadd.f32 1.0, %v200_v40  ;;  %v99_v56 = vor.u32 1.1754944e-38, %v98_v41 }
  0x21   :  { %277 = vrcp.f32 %v447_v43  ;;  %vm472_vm6 = vcmp.lt.f32.partialorder %v203_v42, 0.0004427343  ;;  %v209_v59 = vmul.f32 -0.5, %v430_v30  ;;  %v111_v2 = vand.u32 2147483647, %v447_v43 }
  0x22   :  { %v268_v47 = vpop.eup %267  ;;  %279 = vlog2.f32 %v447_v43  ;;  %v113_v3 = vand.u32 2147483648, %v447_v43  ;;  %v202_v10 = vmul.f32 %v418_v23, %v201_v54  ;;  %v212_v16 = vand.u32 2147483647, %v430_v30 }
  0x23   :  { %v462_v50 = vpop.eup %269  ;;  %v73_v51 = vmul.f32 %v268_v47, %v68_v24  ;;  %vm78_vm7 = vweird.f32 %v268_v47  ;;  %v210_v14 = vadd.f32 1.0, %v209_v59  ;;  %vm107_vm12 = vweird.f32 %v447_v43 }
  0x24   :  { %v272_v55 = vpop.eup %271  ;;  %v487_v7 = vadd.f32 1.0, %v462_v50  ;;  %vm491_vm10 = vmor %vm77_vm0, %vm78_vm7  ;;  %vm505_vm13 = vcmp.eq.f32.partialorder %v111_v2, 8.507059e+37  ;;  %v114_v29 = vor.u32 1.1754944e-38, %v113_v3  ;;  %v510_v31 = vsub.f32 %v178_v46, %v182_v5 }
  0x25   :  { %v274_v60 = vpop.eup %273  ;;  %v74_v61 = vsub.f32 1.0, %v73_v51  ;;  %v88_v62 = vmul.f32 %v272_v55, %v423_v26  ;;  %vm93_vm9 = vweird.f32 %v272_v55  ;;  %v211_v39 = vmul.f32 %v430_v30, %v210_v14 }
  0x26   :  { %v276_v63 = vpop.eup %275  ;;  %v190_v13 = vmul.f32 0.6931472, %v274_v60  ;;  %281 = vrcp.f32 %v487_v7  ;;  %vm500_vm11 = vmor %vm92_vm3, %vm93_vm9  ;;  %vm520_vm0 = vcmp.lt.f32.partialorder %v212_v16, 0.0004427343  ;;  %v128_v57 = vand.u32 2147483648, %v487_v7 }
  0x27   :  { %v75_v8 = vmul.f32 %v268_v47, %v74_v61  ;;  %v89_v9 = vsub.f32 1.0, %v88_v62  ;;  %v278_v11 = vpop.eup %277  ;;  %v199_v21 = vmul.f32 0.6931472, %v276_v63  ;;  %283 = vlog2.f32 %v487_v7 }
  0x28   :  { %v103_v22 = vmul.f32 %v278_v11, %v447_v43  ;;  %v280_v33 = vpop.eup %279  ;;  %vm108_vm15 = vweird.f32 %v278_v11  ;;  %v196_v38 = vsel %vm449_vm1, %v465_v52, %v190_v13  ;;  %v218_v5 = vmul.f32 -0.5, %v462_v50 }
  0x29   :  { %v76_v17 = vadd.f32 %v268_v47, %v75_v8  ;;  %v90_v18 = vmul.f32 %v272_v55, %v89_v9  ;;  %v205_v46 = vsel %vm472_vm6, %v202_v10, %v199_v21  ;;  %vm533_vm1 = vmor %vm107_vm12, %vm108_vm15  ;;  %v208_v51 = vmul.f32 0.6931472, %v280_v33 }
  0x2a   :  { %v104_v36 = vsub.f32 1.0, %v103_v22  ;;  %v224_v2 = vadd.f32 %v196_v38, %v427_v28  ;;  %v225_v10 = vadd.f32 %v205_v46, %v453_v45  ;;  %vm135_vm6 = vcmp.ge.f32.partialorder %v404_v6, 0.0 }
  0x2b   :  { %v80_v35 = vsel %vm491_vm10, %v268_v47, %v76_v17  ;;  %v91_v26 = vadd.f32 %v272_v55, %v90_v18  ;;  %v219_v17 = vadd.f32 1.0, %v218_v5  ;;  %v221_v4 = vand.u32 2147483647, %v462_v50 }
  0x2c   :  { %v85_v37 = vsel %vm456_vm2, %v84_v49, %v80_v35  ;;  %v105_v47 = vmul.f32 %v278_v11, %v104_v36  ;;  %v282_v48 = vpop.eup %281  ;;  %vm122_vm2 = vweird.f32 %v487_v7  ;;  %v163_v35 = vmul.f32 -0.5, %v51_v25 }
  0x2d   :  { %v136_v41 = vmul.f32 %v415_v20, %v85_v37  ;;  %v95_v42 = vsel %vm500_vm11, %v272_v55, %v91_v26  ;;  %v126_v20 = vand.u32 2147483647, %v487_v7  ;;  %v118_v53 = vmul.f32 %v282_v48, %v487_v7  ;;  %v284_v16 = vpop.eup %283 }
  0x2e   :  { %v100_v44 = vsel %vm467_vm4, %v99_v56, %v95_v42  ;;  %v106_v55 = vadd.f32 %v278_v11, %v105_v47  ;;  %vm123_vm3 = vweird.f32 %v282_v48  ;;  %v179_v26 = vmax.f32 %v404_v6, 0.0 }
  0x2f   :  { %v140_v52 = vsel %vm132_vm5, %v85_v37, %v136_v41  ;;  %v137_v54 = vmul.f32 %v418_v23, %v100_v44  ;;  %v119_v61 = vsub.f32 1.0, %v118_v53  ;;  %vm562_vm4 = vmor %vm122_vm2, %vm123_vm3  ;;  %vm127_vm5 = vcmp.eq.f32.partialorder %v126_v20, 8.507059e+37 }
  0x30   :  { %v144_v56 = vadd.f32 %v140_v52, %v407_v15  ;;  %v148_v43 = vmul.f32 2.0, %v140_v52  ;;  %v110_v60 = vsel %vm533_vm1, %v278_v11, %v106_v55  ;;  %v129_v11 = vor.u32 1.1754944e-38, %v128_v57 }
  0x31   :  { %v141_v59 = vsel %vm133_vm8, %v100_v44, %v137_v54  ;;  %v115_v63 = vsel %vm505_vm13, %v114_v29, %v110_v60  ;;  %v120_v1 = vmul.f32 %v282_v48, %v119_v61  ;;  %v217_v40 = vmul.f32 0.6931472, %v284_v16 }
  0x32   :  { %v152_v0 = vmul.f32 %v148_v43, %v407_v15  ;;  %v145_v23 = vadd.f32 %v141_v59, %v413_v19  ;;  %v149_v62 = vmul.f32 2.0, %v141_v59  ;;  %v138_v3 = vmul.f32 %v430_v30, %v115_v63 }
  0x33   :  { %v214_v30 = vsel %vm520_vm0, %v211_v39, %v208_v51  ;;  %v121_v12 = vadd.f32 %v282_v48, %v120_v1  ;;  %v183_v39 = vmul.f32 %v51_v25, %v404_v6  ;;  %vm585_vm7 = vcmp.lt.f32.partialorder %v221_v4, 0.0004427343 }
  0x34   :  { %v156_v8 = vsub.f32 %v144_v56, %v152_v0  ;;  %v153_v9 = vmul.f32 %v149_v62, %v413_v19  ;;  %v142_v28 = vsel %vm134_vm14, %v115_v63, %v138_v3  ;;  %v226_v29 = vadd.f32 %v214_v30, %v510_v31 }
  0x35   :  { %v146_v45 = vadd.f32 %v142_v28, %v437_v34  ;;  %v150_v14 = vmul.f32 2.0, %v142_v28  ;;  %v125_v7 = vsel %vm562_vm4, %v282_v48, %v121_v12  ;;  %v187_v44 = vsub.f32 %v179_v26, %v183_v39 }
  0x36   :  { %v168_v13 = vmul.f32 %v156_v8, %v156_v8  ;;  %v157_v19 = vsub.f32 %v145_v23, %v153_v9  ;;  %v130_v24 = vsel %vm127_vm5, %v129_v11, %v125_v7 }
  0x37   :  { %v154_v22 = vmul.f32 %v150_v14, %v437_v34  ;;  %v139_v33 = vmul.f32 %v462_v50, %v130_v24  ;;  %v220_v34 = vmul.f32 %v462_v50, %v219_v17  ;;  %v167_v50 = vadd.f32 0.75, %v163_v35 }
  0x38   :  { %v172_v18 = vmul.f32 %v168_v13, %v425_v27  ;;  %v169_v21 = vmul.f32 %v157_v19, %v157_v19 }
  0x39   :  { %v158_v38 = vsub.f32 %v146_v45, %v154_v22  ;;  %v143_v27 = vsel %vm135_vm6, %v130_v24, %v139_v33  ;;  %v223_v6 = vsel %vm585_vm7, %v220_v34, %v217_v40 }
  0x3a   :  { %v228_v36 = vmul.f32 %v224_v2, %v172_v18  ;;  %v173_v37 = vmul.f32 %v169_v21, %v433_v32  ;;  %v147_v46 = vadd.f32 %v143_v27, %v51_v25  ;;  %v151_v47 = vmul.f32 2.0, %v143_v27 }
  0x3b   :  { %v170_v42 = vmul.f32 %v158_v38, %v158_v38  ;;  %v227_v52 = vadd.f32 %v223_v6, %v187_v44 }
  0x3c   :  { %232 = vst [vmem:[#allocation7] sm:$0xff] %v228_v36  ;;  %v229_v31 = vmul.f32 %v225_v10, %v173_v37  ;;  %v155_v48 = vmul.f32 %v151_v47, %v51_v25 }
  0x3d   :  { %v174_v32 = vmul.f32 %v170_v42, %v476_v58 }
  0x3e   :  { %233 = vst [vmem:[#allocation7 + $0x8] sm:$0xff] %v229_v31  ;;  %v159_v51 = vsub.f32 %v147_v46, %v155_v48 }
  0x3f   :  { %v230_v49 = vmul.f32 %v226_v29, %v174_v32 }
  0x40   :  { %v171_v20 = vmul.f32 %v159_v51, %v159_v51 }
  0x41   :  { %234 = vst [vmem:[#allocation7 + $0x10] sm:$0xff] %v230_v49 }
  0x42   :  { %v175_v54 = vmul.f32 %v171_v20, %v167_v50 }
  0x44   :  { %v231_v55 = vmul.f32 %v227_v52, %v175_v54 }
  0x46   :  { %235 = vst [vmem:[#allocation7 + $0x18] sm:$0xff] %v231_v55 }
  0x47   :  { %248 = dma.vmem_to_hbm [thread:$0]  %s241_s1, 512, %s243_s23, [#allocation4], %s364_s17, %s364_s17, %s365_s18  }
  0x48   :  { %361 = dma.done.wait [#allocation4], 512  }
  0x49   :  { %362 = vsyncadd [#allocation4], 4294966784 }
  0x4a   :  { %253 = vsyncpa [#allocation3], 1 }
  0x4b   :  { %254 = vsyncpa [#allocation6], 1 }
  0x4c   :  { %255 = vsyncpa [#allocation4], 1 }

</bundles_post_ra>
